<compile_context>
chip_gen: v5e
topology: v5e:2x2
jax: 0.10.0
libtpu: 0.0.40
codegen_flags: <defaults>
</compile_context>

<pallas_src>
import math
from functools import partial, lru_cache

import numpy as np
import jax
import jax.numpy as jnp
from jax.experimental import pallas as pl
from jax.experimental.pallas import tpu as pltpu

_VMEM = pl.BlockSpec(memory_space=pltpu.MemorySpace.VMEM)
_ANY = pl.BlockSpec(memory_space=pl.ANY)
_COS_EPS = 1e-8     # F.cosine_similarity eps
_LN_EPS = 1e-5      # nn.LayerNorm eps


@lru_cache(maxsize=None)
def _vmem_limit_bytes():
    # Generation-aware scoped-VMEM limit (3/4 of physical; >= default on all gens).
    try:
        info = pltpu.get_tpu_info()
        cap = getattr(info, "vmem_capacity_bytes", None)
        if cap:
            return int(cap) * 3 // 4
    except Exception:
        pass
    return 64 * 1024 * 1024


def _compiler_params():
    return pltpu.CompilerParams(vmem_limit_bytes=_vmem_limit_bytes())


# ----------------------------------------------------------------- in-kernel helpers
def _linear(x, w_bf16, b=None):
    # x [N,K] (any float) @ w [K,M] (bf16, pre-transposed host-side) -> f32 [N,M]
    y = jax.lax.dot_general(x.astype(jnp.bfloat16), w_bf16,
                            (((1,), (0,)), ((), ())),
                            preferred_element_type=jnp.float32)
    if b is not None:
        y = y + b
    return y


def _softmax_lastdim(x):
    m = jnp.max(x, axis=-1, keepdims=True)
    e = jnp.exp(x - m)
    return e / jnp.sum(e, axis=-1, keepdims=True)


def _gelu_tanh(x):
    # TODO(synk): tanh-approximate GELU (torch nn.GELU() default is erf-exact, diff ~1e-3).
    c = 0.7978845608028654  # sqrt(2/pi)
    return 0.5 * x * (1.0 + jnp.tanh(c * (x + 0.044715 * x * x * x)))


def _sigmoid(x):
    return 1.0 / (1.0 + jnp.exp(-x))


def _add_ln(x, res, w, b):
    h = x + res
    mu = jnp.mean(h, axis=-1, keepdims=True)
    var = jnp.mean((h - mu) ** 2, axis=-1, keepdims=True)
    return (h - mu) * jax.lax.rsqrt(var + _LN_EPS) * w + b


def _unit_rows(x):
    # rows scaled to unit L2 norm; single EUP rsqrt instead of sqrt+max+reciprocal.
    # TODO(synk): per-row eps clamp vs torch's clamp of ||a||*||b|| (only near-zero rows).
    ss = jnp.sum(x * x, axis=-1, keepdims=True)
    return x * jax.lax.rsqrt(jnp.maximum(ss, _COS_EPS * _COS_EPS))


def _mha(x_q, x_kv, w_in, b_in, w_out, b_out, num_heads):
    # nn.MultiheadAttention (batch_first, unbatched), eval mode (no dropout).
    # Fused QKV projection (bf16 weights, f32 accum) + per-head cores (static unroll,
    # 128-aligned head slices) + single out-projection.
    D = x_q.shape[-1]
    dh = D // num_heads
    scale = 1.0 / math.sqrt(dh)
    if x_q is x_kv:                                          # self-attention: one matmul
        qkv = _linear(x_q, w_in, b_in)                       # [L, 3D]
        q, k, v = qkv[:, :D], qkv[:, D:2 * D], qkv[:, 2 * D:]
    else:                                                    # cross-attention
        q = _linear(x_q, w_in[:, :D], b_in[:, :D])           # [Lq, D]
        kv = _linear(x_kv, w_in[:, D:], b_in[:, D:])         # [Lk, 2D]
        k, v = kv[:, :D], kv[:, D:]
    heads = []
    for h in range(num_heads):                               # static unroll, small H
        qh = q[:, h * dh:(h + 1) * dh].astype(jnp.bfloat16)
        kh = k[:, h * dh:(h + 1) * dh].astype(jnp.bfloat16)
        vh = v[:, h * dh:(h + 1) * dh].astype(jnp.bfloat16)
        s = jax.lax.dot_general(qh, kh, (((1,), (1,)), ((), ())),
                                preferred_element_type=jnp.float32) * scale
        p = _softmax_lastdim(s).astype(jnp.bfloat16)
        heads.append(jax.lax.dot_general(p, vh, (((1,), (0,)), ((), ())),
                                         preferred_element_type=jnp.float32))
    o = jnp.concatenate(heads, axis=-1)                      # [Lq, D]
    return _linear(o, w_out, b_out)                          # single [Lq,D]x[D,D]


# ----------------------------------------------------------------------------- kernels
def _cos_score_kernel(v_ref, t_ref, mask_ref, noise_ref, o_ref, *, temperature):
    # cosine(vision, text) in transposed [Lt, Lv] layout -> masked(0.0) max over text
    # -> + noise -> softmax over tokens.  Output is lane-dense [1, Lv].
    v = _unit_rows(v_ref[...].astype(jnp.float32))           # [Lv, D]
    t = _unit_rows(t_ref[...].astype(jnp.float32))           # [Lt, D]
    cos_t = jax.lax.dot_general(t, v, (((1,), (1,)), ((), ())),
                                preferred_element_type=jnp.float32)   # [Lt, Lv]
    masked = jnp.where(mask_ref[...] != 0, cos_t, 0.0)       # torch masked_fill(mask==False, 0)
    sc = jnp.max(masked, axis=0, keepdims=True)              # [1, Lv]
    sc = (sc + noise_ref[...]) * (1.0 / temperature)
    o_ref[...] = _softmax_lastdim(sc)


def _expander_merge_kernel(
        comb_ref, rem_ref, text_ref,
        sa_wi_ref, sa_bi_ref, sa_wo_ref, sa_bo_ref, n1w_ref, n1b_ref,
        s2_wi_ref, s2_bi_ref, s2_wo_ref, s2_bo_ref, n3w_ref, n3b_ref,
        ca_wi_ref, ca_bi_ref, ca_wo_ref, ca_bo_ref, n2w_ref, n2b_ref,
        f1b_ref, f2b_ref, n4w_ref, n4b_ref,
        spw_ref, spb_ref,
        f1w_hbm, f2w_hbm,
        out_ref,
        concat_scr, ffn_acc, w1_buf, w2_buf, dma_sem,
        *, num_heads, num_combined):
    Nc = num_combined
    comb = comb_ref[...].astype(jnp.float32)                  # [Nc, D]
    rem = rem_ref[...].astype(jnp.float32)                    # [Nr, D]
    text = text_ref[...].astype(jnp.float32)                  # [Lt, D]
    Lt = text.shape[0]
    n_ffn_tiles = f1w_hbm.shape[0]

    # Kick off the first FFN weight-tile DMAs now so HBM->VMEM streaming overlaps the
    # attention blocks (FFN weights stay in HBM: memory_space=pl.ANY).
    pltpu.make_async_copy(f1w_hbm.at[0], w1_buf.at[0], dma_sem.at[0, 0]).start()
    pltpu.make_async_copy(f2w_hbm.at[0], w2_buf.at[0], dma_sem.at[1, 0]).start()

    # concat([combined, text]) built directly in VMEM (no host-side concat / HBM trip).
    concat_scr[0:Nc, :] = comb
    concat_scr[Nc:Nc + Lt, :] = text
    concat = concat_scr[...]                                  # [Nc+Lt, D]

    # -------- ExpanderModule --------
    x = _mha(concat, concat, sa_wi_ref[...], sa_bi_ref[...],
             sa_wo_ref[...], sa_bo_ref[...], num_heads)
    x = _add_ln(x, concat, n1w_ref[...], n1b_ref[...])                      # norm1

    y = _mha(rem, rem, s2_wi_ref[...], s2_bi_ref[...],
             s2_wo_ref[...], s2_bo_ref[...], num_heads)
    remained_ln = _add_ln(y, rem, n3w_ref[...], n3b_ref[...])               # norm3

    x2 = _mha(remained_ln, x, ca_wi_ref[...], ca_bi_ref[...],
              ca_wo_ref[...], ca_bo_ref[...], num_heads)                    # q=remained, kv=x
    x2 = _add_ln(x2, remained_ln, n2w_ref[...], n2b_ref[...])               # norm2

    # -------- FFN: hidden dim streamed from HBM in bf16 tiles, double-buffered DMA ----
    x2_bf = x2.astype(jnp.bfloat16)
    ffn_acc[...] = jnp.zeros_like(ffn_acc)

    @pl.loop(0, n_ffn_tiles)
    def _(t):
        slot = t & 1
        pltpu.make_async_copy(f1w_hbm.at[0], w1_buf.at[slot], dma_sem.at[0, slot]).wait()
        pltpu.make_async_copy(f2w_hbm.at[0], w2_buf.at[slot], dma_sem.at[1, slot]).wait()

        @pl.when(t + 1 < n_ffn_tiles)
        def _():
            nxt = 1 - slot
            pltpu.make_async_copy(f1w_hbm.at[t + 1], w1_buf.at[nxt],
                                  dma_sem.at[0, nxt]).start()
            pltpu.make_async_copy(f2w_hbm.at[t + 1], w2_buf.at[nxt],
                                  dma_sem.at[1, nxt]).start()

        h = jax.lax.dot_general(x2_bf, w1_buf[slot], (((1,), (0,)), ((), ())),
                                preferred_element_type=jnp.float32)         # [Nr, tile]
        h = _gelu_tanh(h + f1b_ref[t]).astype(jnp.bfloat16)
        ffn_acc[...] += jax.lax.dot_general(h, w2_buf[slot], (((1,), (0,)), ((), ())),
                                            preferred_element_type=jnp.float32)

    x_ffn = ffn_acc[...] + f2b_ref[...]
    x3 = _add_ln(x2, x_ffn, n4w_ref[...], n4b_ref[...])                     # norm4

    # score_proj + sigmoid, kept in VMEM, lane-dense [1, Nr]
    s = jax.lax.dot_general(spw_ref[...], x3.astype(jnp.bfloat16),
                            (((1,), (1,)), ((), ())),
                            preferred_element_type=jnp.float32) + spb_ref[...]
    merge_scores = _sigmoid(s)                                              # [1, Nr]

    # -------- token merge (transposed [Nc, Nr] layout; f32 so the argmax stays exact) --
    cos_cr = jax.lax.dot_general(_unit_rows(comb), _unit_rows(rem),
                                 (((1,), (1,)), ((), ())),
                                 preferred_element_type=jnp.float32)        # [Nc, Nr]
    Nr = cos_cr.shape[1]
    col_max = jnp.max(cos_cr, axis=0, keepdims=True)                        # [1, Nr]
    row_ids = jax.lax.broadcasted_iota(jnp.float32, (Nc, Nr), 0)
    cand = jnp.where(cos_cr == col_max, row_ids, jnp.float32(Nc))
    best = jnp.min(cand, axis=0, keepdims=True)                             # first argmax
    one_hot_t = row_ids == best                                             # [Nc, Nr]
    sc_b = jnp.broadcast_to(merge_scores, (Nc, Nr))
    vals = jnp.where(one_hot_t, sc_b, -1e30)
    m = jnp.maximum(jnp.float32(1.0), jnp.max(vals, axis=1, keepdims=True)) # [Nc, 1]
    e_rem = jnp.where(one_hot_t, jnp.exp(sc_b - m), 0.0)                    # [Nc, Nr]
    e_self = jnp.exp(1.0 - m)                                               # [Nc, 1]
    den = e_self + jnp.sum(e_rem, axis=1, keepdims=True)
    remain_w = e_rem / den                   # transposed: contraction on last dim below
    self_w = e_self / den                                                   # [Nc, 1]
    weighted = jax.lax.dot_general(remain_w, rem, (((1,), (0,)), ((), ())),
                                   preferred_element_type=jnp.float32)      # [Nc, D]
    out_ref[...] = (weighted + comb * self_w).astype(out_ref.dtype)


def _cos_sim_kernel(a_ref, b_ref, o_ref):
    # pairwise cosine similarity [M,D]x[N,D] -> [M,N] (only used on the top_k branch)
    a = _unit_rows(a_ref[...].astype(jnp.float32))
    b = _unit_rows(b_ref[...].astype(jnp.float32))
    o_ref[...] = jax.lax.dot_general(a, b, (((1,), (1,)), ((), ())),
                                     preferred_element_type=jnp.float32
                                     ).astype(o_ref.dtype)


# ----------------------------------------------------------------------------- wrappers
def cos_scores_pallas(vision, text, mask_col, noise_row, temperature):
    Lv = vision.shape[0]
    return pl.pallas_call(
        partial(_cos_score_kernel, temperature=float(temperature)),
        out_shape=jax.ShapeDtypeStruct((1, Lv), jnp.float32),
        in_specs=[_VMEM] * 4, out_specs=_VMEM,
        compiler_params=_compiler_params(),
    )(vision, text, mask_col, noise_row)


def expander_merge_pallas(params, combined, remaining, text_embed, num_heads):
    Nc, D = combined.shape
    Nr = remaining.shape[0]
    Lt = text_embed.shape[0]
    f1w = params["ffn"]["w1_tiled"]          # [n_t, D, tile] bf16, streamed from HBM
    f2w = params["ffn"]["w2_tiled"]          # [n_t, tile, D] bf16, streamed from HBM
    _, _, tile = f1w.shape
    vmem_flat = [
        params["self_attn"]["w_in"], params["self_attn"]["b_in"],
        params["self_attn"]["w_out"], params["self_attn"]["b_out"],
        params["norm1"]["w"], params["norm1"]["b"],
        params["self_attn_2"]["w_in"], params["self_attn_2"]["b_in"],
        params["self_attn_2"]["w_out"], params["self_attn_2"]["b_out"],
        params["norm3"]["w"], params["norm3"]["b"],
        params["cross_attn"]["w_in"], params["cross_attn"]["b_in"],
        params["cross_attn"]["w_out"], params["cross_attn"]["b_out"],
        params["norm2"]["w"], params["norm2"]["b"],
        params["ffn"]["b1_tiled"], params["ffn"]["b2"],
        params["norm4"]["w"], params["norm4"]["b"],
        params["score_proj"]["w"], params["score_proj"]["b"],
    ]
    return pl.pallas_call(
        partial(_expander_merge_kernel, num_heads=num_heads, num_combined=Nc),
        out_shape=jax.ShapeDtypeStruct((Nc, D), jnp.float32),
        in_specs=[_VMEM] * (3 + len(vmem_flat)) + [_ANY, _ANY],
        out_specs=_VMEM,
        scratch_shapes=[
            pltpu.VMEM((Nc + Lt, D), jnp.float32),   # concat([combined, text])
            pltpu.VMEM((Nr, D), jnp.float32),        # FFN accumulator
            pltpu.VMEM((2, D, tile), jnp.bfloat16),  # streamed w1 tiles (double buffer)
            pltpu.VMEM((2, tile, D), jnp.bfloat16),  # streamed w2 tiles (double buffer)
            pltpu.SemaphoreType.DMA((2, 2)),
        ],
        compiler_params=_compiler_params(),
    )(combined, remaining, text_embed, *vmem_flat, f1w, f2w)


def cos_sim_pallas(a, b):
    M, _ = a.shape
    N, _ = b.shape
    return pl.pallas_call(
        _cos_sim_kernel,
        out_shape=jax.ShapeDtypeStruct((M, N), jnp.float32),
        in_specs=[_VMEM, _VMEM], out_specs=_VMEM,
        compiler_params=_compiler_params(),
    )(a, b)


# ----------------------------------------------------------------------------- params
def init_expander_params(key, embed_dim, hidden_dim, *, ffn_tile=256):
    bf16 = jnp.bfloat16

    def dense(k, shape, scale=0.05):
        return jax.random.normal(k, shape, jnp.float32) * scale

    keys = jax.random.split(key, 8)

    def attn(k):
        kk = jax.random.split(k, 4)
        # torch in_proj_weight is [3D, D]; stored pre-transposed [D, 3D] (bf16) so the
        # MXU contraction dim is leading and no in-kernel relayout is needed.
        w_in_t = jnp.concatenate([dense(kk[0], (embed_dim, embed_dim)),
                                  dense(kk[1], (embed_dim, embed_dim)),
                                  dense(kk[2], (embed_dim, embed_dim))], axis=1)
        return {"w_in": w_in_t.astype(bf16),
                "b_in": jnp.zeros((1, 3 * embed_dim), jnp.float32),
                "w_out": dense(kk[3], (embed_dim, embed_dim)).astype(bf16),  # [D, D]^T
                "b_out": jnp.zeros((1, embed_dim), jnp.float32)}

    def ln():
        return {"w": jnp.ones((1, embed_dim), jnp.float32),
                "b": jnp.zeros((1, embed_dim), jnp.float32)}

    # FFN weights pre-transposed and pre-tiled over the hidden dim so each streamed
    # HBM->VMEM tile is a contiguous block with the contraction dim leading.
    tile = min(ffn_tile, hidden_dim)
    assert hidden_dim % tile == 0 and tile % 128 == 0
    n_t = hidden_dim // tile
    w1 = dense(keys[3], (embed_dim, hidden_dim))                 # [D, H] (already ^T)
    w2 = dense(keys[4], (hidden_dim, embed_dim))                 # [H, D] (already ^T)
    w1_tiled = w1.reshape(embed_dim, n_t, tile).transpose(1, 0, 2).astype(bf16)
    w2_tiled = w2.reshape(n_t, tile, embed_dim).astype(bf16)

    return {
        "self_attn": attn(keys[0]),
        "self_attn_2": attn(keys[1]),
        "cross_attn": attn(keys[2]),
        "norm1": ln(), "norm2": ln(), "norm3": ln(), "norm4": ln(),
        "ffn": {"w1_tiled": w1_tiled,
                "b1_tiled": jnp.zeros((n_t, 1, tile), jnp.float32),
                "w2_tiled": w2_tiled,
                "b2": jnp.zeros((1, embed_dim), jnp.float32)},
        "score_proj": {"w": dense(keys[5], (1, embed_dim)).astype(bf16),
                       "b": jnp.zeros((1, 1), jnp.float32)},
    }


# ----------------------------------------------------------------------------- host glue
def get_neighbor_indices(indices, grid_size, padding_size):
    idx = np.asarray(indices, dtype=np.int64)
    coords = np.stack((idx // grid_size, idx % grid_size), axis=1)
    offsets = np.array([[i, j]
                        for i in range(-padding_size, padding_size + 1)
                        for j in range(-padding_size, padding_size + 1)
                        if not (i == 0 and j == 0)], dtype=np.int64)
    padded = coords[:, None, :] + offsets[None, :, :]
    padded = np.clip(padded, 0, grid_size - 1)
    return padded[:, :, 0] * grid_size + padded[:, :, 1]


def spatially_uniform_sample(grid_size, sample_size, rng):
    assert grid_size % sample_size == 0
    region_size = grid_size // sample_size
    sampled = []
    for i in range(sample_size):
        for j in range(sample_size):
            region_start = i * region_size * grid_size + j * region_size
            region_indices = (region_start
                              + np.arange(0, region_size * grid_size, grid_size)[:, None]
                              + np.arange(region_size)).flatten()
            sampled.append(int(region_indices[rng.integers(0, len(region_indices))]))
    return np.asarray(sampled, dtype=np.int64)


def cos_sim_router_forward(params, vision_feature, text_embed, attention_mask, *,
                           gamma=0.06, noise_std=0.0, temperature=0.05, top_k=0,
                           padding_size=1, num_heads=4, sample_size=6,
                           noise_key=None, sample_seed=0):
    L_v, D = vision_feature.shape
    L_t, _ = text_embed.shape

    # -- fused cosine + masked-max + noise + softmax (Pallas, lane-dense output) --
    mask_col = jnp.asarray(attention_mask, jnp.int32).reshape(L_t, 1)
    noise_row = (jax.random.normal(noise_key, (1, L_v), jnp.float32) * noise_std
                 if noise_key is not None else jnp.zeros((1, L_v), jnp.float32))
    scores = cos_scores_pallas(vision_feature, text_embed, mask_col, noise_row,
                               temperature)                              # [1, Lv]

    # -- data-dependent token selection (host NumPy, mirrors torch control flow) --
    # TODO(synk): this D2H sync serializes the forward; move to fixed-size padded
    #             device-side selection (lax.top_k + PrefetchScalarGridSpec gather).
    s = np.asarray(jax.device_get(scores))[0]
    order = np.argsort(-s, kind="stable")
    cum = np.cumsum(s[order])
    threshold_index = int(np.sum(cum <= gamma))
    selected_idx = order[:threshold_index]
    if padding_size > 0:
        nb = get_neighbor_indices(selected_idx, int(L_v ** 0.5), padding_size)
        unique_idx = np.unique(nb.flatten())
    else:
        unique_idx = np.unique(selected_idx)  # TODO(synk): torch would NameError here
    rng = np.random.default_rng(sample_seed)
    sampled_idx = spatially_uniform_sample(int(L_v ** 0.5), sample_size, rng)
    combined_idx = np.unique(np.concatenate([unique_idx.astype(np.int64), sampled_idx]))
    all_idx = np.arange(L_v)
    remaining_idx = all_idx[~np.isin(all_idx, combined_idx)]

    # TODO(synk): row gathers stay in XLA; in-kernel gather via PrefetchScalarGridSpec
    #             + pl.Element index_map is a follow-up for production sizes.
    combined_features = vision_feature[jnp.asarray(combined_idx)]
    remaining_features = vision_feature[jnp.asarray(remaining_idx)]

    if remaining_features.shape[0] > 0:
        # -- fused expander chain + streamed FFN + token merge (single Pallas kernel) --
        new_selected = expander_merge_pallas(params, combined_features,
                                             remaining_features, text_embed, num_heads)
    else:
        new_selected = combined_features  # TODO(synk): torch leaves this undefined

    if top_k == 0:
        return new_selected
    sel_cos = cos_sim_pallas(new_selected, vision_feature)
    top_vals, top_idx = jax.lax.top_k(sel_cos, top_k)
    top_feat = vision_feature[top_idx]
    w = jax.nn.softmax(top_vals, axis=-1)
    return jnp.sum(top_feat * w[..., None], axis=1)


# ----------------------------------------------------------------------------- main
if __name__ == "__main__":
    # Small stand-in for the 4096/8192/16 defaults; dh = D/H = 128 keeps head slices
    # lane-aligned (MXU-friendly) as per the perf review.
    EMBED_DIM, HIDDEN_DIM, NUM_HEADS = 256, 512, 2
    GRID, SAMPLE = 12, 6                      # stand-in for the 24x24 / 6 defaults
    L_V, L_T = GRID * GRID, 8

    key = jax.random.PRNGKey(0)
    k_vis, k_txt, k_par, k_noise = jax.random.split(key, 4)
    vision_feature = jax.random.normal(k_vis, (L_V, EMBED_DIM), jnp.float32)
    text_embed = jax.random.normal(k_txt, (L_T, EMBED_DIM), jnp.float32)
    attention_mask = jnp.array([True] * (L_T - 1) + [False])

    params = init_expander_params(k_par, EMBED_DIM, HIDDEN_DIM, ffn_tile=256)

    out = cos_sim_router_forward(
        params, vision_feature, text_embed, attention_mask,
        gamma=0.06, noise_std=0.0, temperature=0.05, top_k=0,
        padding_size=1, num_heads=NUM_HEADS, sample_size=SAMPLE,
        noise_key=k_noise, sample_seed=0)
    out = jax.block_until_ready(out)

    assert out.ndim == 2 and out.shape[1] == EMBED_DIM
    assert bool(jnp.all(jnp.isfinite(out)))
    print("KERNEL_OK")
</pallas_src>

<mosaic_0001>
module attributes {stable_mosaic.version = 11 : i64} {
  func.func @_cos_score_kernel(%arg0: memref<144x256xf32, #tpu.memory_space<vmem>>, %arg1: memref<8x256xf32, #tpu.memory_space<vmem>>, %arg2: memref<8x1xi32, #tpu.memory_space<vmem>>, %arg3: memref<1x144xf32, #tpu.memory_space<vmem>>, %arg4: memref<1x144xf32, #tpu.memory_space<vmem>>) attributes {dimension_semantics = [], scalar_prefetch = 0 : i64, scratch_operands = 0 : i64, tpu.core_type = #tpu.core_type<tc>} {
    %c0 = arith.constant 0 : index
    %c0_0 = arith.constant 0 : index
    %0 = vector.load %arg0[%c0, %c0_0] : memref<144x256xf32, #tpu.memory_space<vmem>>, vector<144x256xf32>
    %1 = arith.mulf %0, %0 : vector<144x256xf32>
    %cst = arith.constant dense<0.000000e+00> : vector<144xf32>
    %2 = vector.multi_reduction <add>, %1, %cst [1] : vector<144x256xf32> to vector<144xf32>
    %3 = vector.shape_cast %2 : vector<144xf32> to vector<144x1xf32>
    %cst_1 = arith.constant 1.000000e-16 : f32
    %4 = vector.broadcast %cst_1 : f32 to vector<144x1xf32>
    %5 = arith.maximumf %3, %4 : vector<144x1xf32>
    %6 = math.rsqrt %5 : vector<144x1xf32>
    %7 = vector.broadcast %6 : vector<144x1xf32> to vector<144x256xf32>
    %8 = arith.mulf %0, %7 : vector<144x256xf32>
    %c0_2 = arith.constant 0 : index
    %c0_3 = arith.constant 0 : index
    %9 = vector.load %arg1[%c0_2, %c0_3] : memref<8x256xf32, #tpu.memory_space<vmem>>, vector<8x256xf32>
    %10 = arith.mulf %9, %9 : vector<8x256xf32>
    %cst_4 = arith.constant dense<0.000000e+00> : vector<8xf32>
    %11 = vector.multi_reduction <add>, %10, %cst_4 [1] : vector<8x256xf32> to vector<8xf32>
    %12 = vector.shape_cast %11 : vector<8xf32> to vector<8x1xf32>
    %cst_5 = arith.constant 1.000000e-16 : f32
    %13 = vector.broadcast %cst_5 : f32 to vector<8x1xf32>
    %14 = arith.maximumf %12, %13 : vector<8x1xf32>
    %15 = math.rsqrt %14 : vector<8x1xf32>
    %16 = vector.broadcast %15 : vector<8x1xf32> to vector<8x256xf32>
    %17 = arith.mulf %9, %16 : vector<8x256xf32>
    %cst_6 = arith.constant dense<0.000000e+00> : vector<8x144xf32>
    %18 = tpu.matmul %17, %8, %cst_6 {dimension_numbers = #tpu.dot_dimension_numbers<[1], [1], [0], [0], [0, 0, 1, 0], [], []>} : vector<8x256xf32>, vector<144x256xf32>, vector<8x144xf32> -> vector<8x144xf32>
    %c0_7 = arith.constant 0 : index
    %c0_8 = arith.constant 0 : index
    %19 = vector.load %arg2[%c0_7, %c0_8] : memref<8x1xi32, #tpu.memory_space<vmem>>, vector<8x1xi32>
    %c0_i32 = arith.constant 0 : i32
    %20 = vector.broadcast %c0_i32 : i32 to vector<8x1xi32>
    %21 = arith.cmpi ne, %19, %20 : vector<8x1xi32>
    %cst_9 = arith.constant 0.000000e+00 : f32
    %22 = vector.shape_cast %21 : vector<8x1xi1> to vector<8x1xi1>
    %23 = vector.broadcast %22 : vector<8x1xi1> to vector<8x144xi1>
    %24 = vector.broadcast %cst_9 : f32 to vector<8x144xf32>
    %25 = arith.select %23, %18, %24 : vector<8x144xi1>, vector<8x144xf32>
    %cst_10 = arith.constant dense<0xFF800000> : vector<144xf32>
    %26 = vector.multi_reduction <maximumf>, %25, %cst_10 [0] : vector<8x144xf32> to vector<144xf32>
    %27 = vector.shape_cast %26 : vector<144xf32> to vector<1x144xf32>
    %c0_11 = arith.constant 0 : index
    %c0_12 = arith.constant 0 : index
    %28 = vector.load %arg3[%c0_11, %c0_12] : memref<1x144xf32, #tpu.memory_space<vmem>>, vector<1x144xf32>
    %29 = arith.addf %27, %28 : vector<1x144xf32>
    %cst_13 = arith.constant 2.000000e+01 : f32
    %30 = vector.broadcast %cst_13 : f32 to vector<1x144xf32>
    %31 = arith.mulf %29, %30 : vector<1x144xf32>
    %cst_14 = arith.constant dense<0xFF800000> : vector<1xf32>
    %32 = vector.multi_reduction <maximumf>, %31, %cst_14 [1] : vector<1x144xf32> to vector<1xf32>
    %33 = vector.shape_cast %32 : vector<1xf32> to vector<1x1xf32>
    %34 = vector.broadcast %33 : vector<1x1xf32> to vector<1x144xf32>
    %35 = arith.subf %31, %34 : vector<1x144xf32>
    %36 = math.exp %35 : vector<1x144xf32>
    %cst_15 = arith.constant dense<0.000000e+00> : vector<1xf32>
    %37 = vector.multi_reduction <add>, %36, %cst_15 [1] : vector<1x144xf32> to vector<1xf32>
    %38 = vector.shape_cast %37 : vector<1xf32> to vector<1x1xf32>
    %39 = vector.broadcast %38 : vector<1x1xf32> to vector<1x144xf32>
    %40 = arith.divf %36, %39 : vector<1x144xf32>
    %c0_16 = arith.constant 0 : index
    %c0_17 = arith.constant 0 : index
    %41 = vector.load %arg4[%c0_16, %c0_17] : memref<1x144xf32, #tpu.memory_space<vmem>>, vector<1x144xf32>
    tpu.vector_store %arg4[%c0_16, %c0_17], %40 {strides = array<i32>} : memref<1x144xf32, #tpu.memory_space<vmem>>, vector<1x144xf32>,
    return
  }
}

</mosaic_0001>

<bundles_post_ra>
// kernel: tpu_custom_call.1
= control target key start
LH: loop header
LB: loop body
LE: loop exit
PB: predicated region body
PF: predicated region fallthrough
CT: control target
= control target key end

     0   :  { %9 = vsyncpa [#allocation3], 0  ;;  %s1268_s0 = inlined_call_operand.hbm [shape: f32[144,256], index: 0, kind: input, shape index: {}]   ;;  %s1269_s1 = inlined_call_operand.hbm [shape: f32[8,256], index: 1, kind: input, shape index: {}]   ;;  %s1270_s2 = inlined_call_operand.vmem [shape: s32[8,1], index: 2, kind: input, shape index: {}]   ;;  %s1271_s3 = inlined_call_operand.vmem [shape: f32[1,144], index: 3, kind: input, shape index: {}]   ;;  %s1272_s4 = inlined_call_operand.hbm [shape: f32[1,144], index: 4, kind: output, shape index: {}]  }
   0x1   :  { %10 = vsyncpa [#allocation6], 0 }
   0x2   :  { %11 = vsyncpa [#allocation4], 0  ;;  %s16_s17 = sshll.u32 %s1268_s0, 4  ;;  %s733_s18 = smov [#allocation2]   ;;  %s17_s17 = int_to_ptr.hbm [resolvable:$true] %s16_s17 }
   0x3   :  { %s18_s19 = sshll.u32 %s733_s18, 4  ;;  %s30_s22 = sshll.u32 %s1269_s1, 4  ;;  %s19_s19 = int_to_ptr.vmem [resolvable:$true] %s18_s19  ;;  %s31_s22 = int_to_ptr.hbm [resolvable:$true] %s30_s22 }
   0x4   :  { %s734_s23 = smov 256   ;;  %s735_s24 = smov 16  }
   0x5   :  { %24 = dma.hbm_to_vmem [thread:$0]  %s17_s17, 4608, %s19_s19, [#allocation3], %s734_s23, %s734_s23, %s735_s24  }
   0x6   :  { %s736_s25 = smov [#allocation5]  }
   0x7   :  { %s32_s26 = sshll.u32 %s736_s25, 4  ;;  %s33_s26 = int_to_ptr.vmem [resolvable:$true] %s32_s26 }
   0x8   :  { %35 = dma.hbm_to_vmem [thread:$0]  %s31_s22, 256, %s33_s26, [#allocation6]  }
   0x9   :  { %727 = dma.done.wait [#allocation3], 4608  }
   0xa   :  { %728 = vsyncadd [#allocation3], 4294962688 }
   0xb   :  { %729 = dma.done.wait [#allocation6], 256  }
   0xc   :  { %730 = vsyncadd [#allocation6], 4294967040  ;;  %v770_v0 = vld [vmem:[#allocation2 + $0xf0] sm:$0xff]  ;;  %v772_v1 = vld [vmem:[#allocation2 + $0xf8] sm:$0xff]  ;;  %s592_s5 = sshll.u32 %s1272_s4, 4  ;;  %s593_s5 = int_to_ptr.hbm [resolvable:$true] %s592_s5 }
   0xd   :  { %v774_v2 = vld [vmem:[#allocation2 + $0xd0] sm:$0xff]  ;;  %v114_v3 = vmul.f32 %v770_v0, %v770_v0  ;;  %v115_v4 = vmul.f32 %v772_v1, %v772_v1  ;;  %v780_v5 = vld [vmem:[#allocation2 + $0xd8] sm:$0xff]  ;;  %v794_v12 = vld [vmem:[#allocation2 + $0xe0] sm:$0xff] }
   0xe   :  { %v110_v6 = vmul.f32 %v774_v2, %v774_v2  ;;  %v784_v7 = vld [vmem:[#allocation2 + $0xb0] sm:$0xff]  ;;  %v786_v8 = vld [vmem:[#allocation2 + $0xb8] sm:$0xff]  ;;  %v111_v9 = vmul.f32 %v780_v5, %v780_v5  ;;  %v796_v13 = vld [vmem:[#allocation2 + $0xe8] sm:$0xff]  ;;  %v112_v21 = vmul.f32 %v794_v12, %v794_v12 }
   0xf   :  { %v106_v10 = vmul.f32 %v784_v7, %v784_v7  ;;  %v107_v11 = vmul.f32 %v786_v8, %v786_v8  ;;  %v798_v14 = vld [vmem:[#allocation2 + $0xc0] sm:$0xff]  ;;  %v165_v15 = vadd.f32 %v115_v4, %v114_v3  ;;  %v800_v16 = vld [vmem:[#allocation2 + $0xc8] sm:$0xff]  ;;  %v113_v22 = vmul.f32 %v796_v13, %v796_v13  ;;  %v818_v30 = vld [vmem:[#allocation2 + $0x90] sm:$0xff] }
  0x10   :  { %v802_v17 = vld [vmem:[#allocation2 + $0xa0] sm:$0xff]  ;;  %v804_v18 = vld [vmem:[#allocation2 + $0xa8] sm:$0xff]  ;;  %v159_v19 = vadd.f32 %v111_v9, %v110_v6  ;;  %v108_v23 = vmul.f32 %v798_v14, %v798_v14  ;;  %v109_v24 = vmul.f32 %v800_v16, %v800_v16  ;;  %v820_v31 = vld [vmem:[#allocation2 + $0x98] sm:$0xff]  ;;  %v102_v36 = vmul.f32 %v818_v30, %v818_v30 }
  0x11   :  { %v153_v20 = vadd.f32 %v107_v11, %v106_v10  ;;  %166 = vadd.xlane.f32.xlu0 %v165_v15  ;;  %v104_v25 = vmul.f32 %v802_v17, %v802_v17  ;;  %v105_v26 = vmul.f32 %v804_v18, %v804_v18  ;;  %v162_v27 = vadd.f32 %v113_v22, %v112_v21  ;;  %v822_v32 = vld [vmem:[#allocation2 + $0x80] sm:$0xff]  ;;  %v824_v33 = vld [vmem:[#allocation2 + $0x88] sm:$0xff]  ;;  %v826_v34 = vld [vmem:[#allocation2 + $0x70] sm:$0xff] }
  0x12   :  { %160 = vadd.xlane.f32.xlu1 %v159_v19  ;;  %v156_v28 = vadd.f32 %v109_v24, %v108_v23  ;;  %v828_v35 = vld [vmem:[#allocation2 + $0x78] sm:$0xff]  ;;  %v103_v37 = vmul.f32 %v820_v31, %v820_v31  ;;  %v100_v38 = vmul.f32 %v822_v32, %v822_v32  ;;  %v101_v39 = vmul.f32 %v824_v33, %v824_v33  ;;  %v842_v45 = vld [vmem:[#allocation2 + $0x60] sm:$0xff]  ;;  %v844_v46 = vld [vmem:[#allocation2 + $0x68] sm:$0xff] }
  0x13   :  { %154 = vadd.xlane.f32.xlu2 %v153_v20  ;;  %v150_v29 = vadd.f32 %v105_v26, %v104_v25  ;;  %v98_v40 = vmul.f32 %v826_v34, %v826_v34  ;;  %v99_v41 = vmul.f32 %v828_v35, %v828_v35  ;;  %v846_v47 = vld [vmem:[#allocation2 + $0x40] sm:$0xff]  ;;  %v848_v48 = vld [vmem:[#allocation2 + $0x48] sm:$0xff]  ;;  %v850_v49 = vld [vmem:[#allocation2 + $0x50] sm:$0xff]  ;;  %v96_v51 = vmul.f32 %v842_v45, %v842_v45 }
  0x14   :  { %v147_v42 = vadd.f32 %v103_v37, %v102_v36  ;;  %v144_v43 = vadd.f32 %v101_v39, %v100_v38  ;;  %v852_v50 = vld [vmem:[#allocation2 + $0x58] sm:$0xff]  ;;  %v97_v52 = vmul.f32 %v844_v46, %v844_v46  ;;  %v92_v53 = vmul.f32 %v846_v47, %v846_v47  ;;  %v866_v60 = vld [vmem:[#allocation2 + $0x30] sm:$0xff]  ;;  %v870_v62 = vld [vmem:[#allocation2 + $0x20] sm:$0xff] }
  0x15   :  { %v141_v44 = vadd.f32 %v99_v41, %v98_v40  ;;  %v93_v54 = vmul.f32 %v848_v48, %v848_v48  ;;  %v94_v55 = vmul.f32 %v850_v49, %v850_v49  ;;  %v95_v56 = vmul.f32 %v852_v50, %v852_v50  ;;  %v868_v61 = vld [vmem:[#allocation2 + $0x38] sm:$0xff]  ;;  %v872_v63 = vld [vmem:[#allocation2 + $0x28] sm:$0xff]  ;;  %v874_v3 = vld [vmem:[#allocation2 + $0x110] sm:$0xff] }
  0x16   :  { %v138_v57 = vadd.f32 %v97_v52, %v96_v51  ;;  %v876_v4 = vld [vmem:[#allocation2 + $0x118] sm:$0xff]  ;;  %v90_v6 = vmul.f32 %v866_v60, %v866_v60  ;;  %v91_v9 = vmul.f32 %v868_v61, %v868_v61  ;;  %v88_v10 = vmul.f32 %v870_v62, %v870_v62  ;;  %v890_v23 = vld [vmem:[#allocation2 + $0x100] sm:$0xff]  ;;  %v892_v24 = vld [vmem:[#allocation2 + $0x108] sm:$0xff] }
  0x17   :  { %v132_v58 = vadd.f32 %v93_v54, %v92_v53  ;;  %v135_v59 = vadd.f32 %v95_v56, %v94_v55  ;;  %v89_v11 = vmul.f32 %v872_v63, %v872_v63  ;;  %v118_v15 = vmul.f32 %v874_v3, %v874_v3  ;;  %v894_v25 = vld [vmem:[#allocation5] sm:$0xff]  ;;  %v896_v26 = vld [vmem:[#allocation5 + $0x8] sm:$0xff] }
  0x18   :  { %v119_v19 = vmul.f32 %v876_v4, %v876_v4  ;;  %v129_v20 = vadd.f32 %v91_v9, %v90_v6  ;;  %v117_v36 = vmul.f32 %v892_v24, %v892_v24  ;;  %v410_v37 = vmul.f32 %v894_v25, %v894_v25  ;;  %v916_v51 = vld [vmem:[#allocation2 + $0x8] sm:$0xff] }
  0x19   :  { %163 = vadd.xlane.f32.xlu0 %v162_v27  ;;  %v126_v21 = vadd.f32 %v89_v11, %v88_v10  ;;  %v898_v27 = vld [vmem:[#allocation2 + $0x10] sm:$0xff]  ;;  %v411_v38 = vmul.f32 %v896_v26, %v896_v26  ;;  %1280 = vst [vmem:[#allocation14_spill] sm:$0xff] %v916_v51  ;;  %v85_v53 = vmul.f32 %v916_v51, %v916_v51 }
  0x1a   :  { %157 = vadd.xlane.f32.xlu1 %v156_v28  ;;  %v171_v22 = vadd.f32 %v119_v19, %v118_v15  ;;  %1277 = vst [vmem:[#allocation11_spill] sm:$0xff] %v898_v27  ;;  %v900_v28 = vld [vmem:[#allocation2 + $0x18] sm:$0xff]  ;;  %v86_v39 = vmul.f32 %v898_v27, %v898_v27 }
  0x1b   :  { %151 = vadd.xlane.f32.xlu2 %v150_v29  ;;  %1278 = vst [vmem:[#allocation12_spill] sm:$0xff] %v900_v28  ;;  %v116_v29 = vmul.f32 %v890_v23, %v890_v23  ;;  %v87_v40 = vmul.f32 %v900_v28, %v900_v28 }
  0x1d   :  { %v168_v41 = vadd.f32 %v117_v36, %v116_v29 }
  0x21   :  { %148 = vadd.xlane.f32.xlu0 %v147_v42  ;;  %v412_v42 = vadd.f32 %v411_v38, %v410_v37 }
  0x22   :  { %145 = vadd.xlane.f32.xlu1 %v144_v43  ;;  %v123_v43 = vadd.f32 %v87_v40, %v86_v39 }
  0x23   :  { %142 = vadd.xlane.f32.xlu2 %v141_v44  ;;  %v914_v44 = vld [vmem:[#allocation2] sm:$0xff] }
  0x24   :  { %1279 = vst [vmem:[#allocation13_spill] sm:$0xff] %v914_v44  ;;  %v84_v52 = vmul.f32 %v914_v44, %v914_v44 }
  0x26   :  { %v120_v54 = vadd.f32 %v85_v53, %v84_v52 }
  0x29   :  { %139 = vadd.xlane.f32.xlu0 %v138_v57 }
  0x2a   :  { %136 = vadd.xlane.f32.xlu1 %v135_v59 }
  0x2b   :  { %133 = vadd.xlane.f32.xlu2 %v132_v58 }
  0x31   :  { %130 = vadd.xlane.f32.xlu0 %v129_v20 }
  0x32   :  { %172 = vadd.xlane.f32.xlu1 %v171_v22 }
  0x33   :  { %127 = vadd.xlane.f32.xlu2 %v126_v21 }
  0x39   :  { %169 = vadd.xlane.f32.xlu0 %v168_v41 }
  0x3a   :  { %124 = vadd.xlane.f32.xlu1 %v123_v43 }
  0x3b   :  { %413 = vadd.xlane.f32.xlu2 %v412_v42 }
  0x41   :  { %121 = vadd.xlane.f32.xlu0 %v120_v54 }
  0x84   :  { %v167_v55 = vpop.xlane.xlu0 %166 }
  0x85   :  { %v189_v56 = vmax.f32 %v167_v55, 1e-16  ;;  %v161_v57 = vpop.xlane.xlu1 %160 }
  0x86   :  { %v155_v58 = vpop.xlane.xlu2 %154  ;;  %v922_v59 = vmax.f32 %v161_v57, 1e-16 }
  0x87   :  { %611 = vrsqrt.f32 %v189_v56  ;;  %v925_v6 = vmax.f32 %v155_v58, 1e-16  ;;  %vm348_vm1 = vweird.f32 %v189_v56 }
  0x88   :  { %613 = vrsqrt.f32 %v922_v59  ;;  %vm328_vm3 = vweird.f32 %v922_v59 }
  0x89   :  { %615 = vrsqrt.f32 %v925_v6  ;;  %vm308_vm7 = vweird.f32 %v925_v6 }
  0x8c   :  { %v164_v9 = vpop.xlane.xlu0 %163 }
  0x8d   :  { %v612_v10 = vpop.eup %611  ;;  %v928_v11 = vmax.f32 %v164_v9, 1e-16  ;;  %v158_v15 = vpop.xlane.xlu1 %157 }
  0x8e   :  { %v152_v19 = vpop.xlane.xlu2 %151  ;;  %v930_v20 = vpop.eup %613  ;;  %v343_v21 = vmul.f32 %v612_v10, %v189_v56  ;;  %v932_v22 = vmax.f32 %v158_v15, 1e-16  ;;  %vm349_vm0 = vweird.f32 %v612_v10 }
  0x8f   :  { %v934_v29 = vmax.f32 %v152_v19, 1e-16  ;;  %v323_v36 = vmul.f32 %v930_v20, %v922_v59  ;;  %617 = vrsqrt.f32 %v928_v11  ;;  %v941_v38 = vpop.eup %615  ;;  %vm350_vm2 = vmor %vm348_vm1, %vm349_vm0  ;;  %vm338_vm4 = vweird.f32 %v928_v11 }
  0x90   :  { %v344_v37 = vmul.f32 %v612_v10, %v343_v21  ;;  %619 = vrsqrt.f32 %v932_v22  ;;  %v303_v52 = vmul.f32 %v941_v38, %v925_v6  ;;  %vm329_vm6 = vweird.f32 %v930_v20 }
  0x91   :  { %621 = vrsqrt.f32 %v934_v29  ;;  %v324_v40 = vmul.f32 %v930_v20, %v323_v36  ;;  %vm318_vm9 = vweird.f32 %v932_v22  ;;  %vm330_vm10 = vmor %vm328_vm3, %vm329_vm6  ;;  %vm309_vm11 = vweird.f32 %v941_v38 }
  0x92   :  { %v345_v39 = vmul.f32 0.5, %v344_v37  ;;  %vm1017_vm13 = vmor %vm308_vm7, %vm309_vm11  ;;  %vm298_vm15 = vweird.f32 %v934_v29 }
  0x93   :  { %v325_v58 = vmul.f32 0.5, %v324_v40  ;;  %v304_v40 = vmul.f32 %v941_v38, %v303_v52 }
  0x94   :  { %v149_v41 = vpop.xlane.xlu0 %148  ;;  %v346_v42 = vsub.f32 1.5, %v345_v39 }
  0x95   :  { %v618_v43 = vpop.eup %617  ;;  %v946_v53 = vmax.f32 %v149_v41, 1e-16  ;;  %v146_v54 = vpop.xlane.xlu1 %145 }
  0x96   :  { %v143_v55 = vpop.xlane.xlu2 %142  ;;  %v948_v57 = vpop.eup %619  ;;  %v333_v9 = vmul.f32 %v618_v43, %v928_v11  ;;  %v951_v15 = vmax.f32 %v146_v54, 1e-16  ;;  %v347_v37 = vmul.f32 %v612_v10, %v346_v42  ;;  %vm339_vm5 = vweird.f32 %v618_v43 }
  0x97   :  { %v953_v19 = vpop.eup %621  ;;  %v313_v21 = vmul.f32 %v948_v57, %v932_v22  ;;  %623 = vrsqrt.f32 %v946_v53  ;;  %v958_v36 = vmax.f32 %v143_v55, 1e-16  ;;  %v326_v55 = vsub.f32 1.5, %v325_v58  ;;  %vm340_vm8 = vmor %vm338_vm4, %vm339_vm5 }
  0x98   :  { %v334_v39 = vmul.f32 %v618_v43, %v333_v9  ;;  %625 = vrsqrt.f32 %v951_v15  ;;  %v351_v54 = vsel %vm350_vm2, %v612_v10, %v347_v37  ;;  %v293_v51 = vmul.f32 %v953_v19, %v934_v29 }
  0x99   :  { %v314_v41 = vmul.f32 %v948_v57, %v313_v21  ;;  %v402_v44 = vmul.f32 %v351_v54, %v770_v0  ;;  %v403_v28 = vmul.f32 %v351_v54, %v772_v1  ;;  %627 = vrsqrt.f32 %v958_v36 }
  0x9a   :  { %v335_v56 = vmul.f32 0.5, %v334_v39  ;;  %v305_v9 = vmul.f32 0.5, %v304_v40  ;;  %v294_v58 = vmul.f32 %v953_v19, %v293_v51  ;;  %v327_v54 = vmul.f32 %v930_v20, %v326_v55 }
  0x9b   :  { %v315_v27 = vmul.f32 0.5, %v314_v41  ;;  %428 = vmatpush.xpose.msra.mxu0 %v402_v44  ;;  %448 = vmatpush.xpose.msra.mxu1 %v403_v28  ;;  %vm319_vm12 = vweird.f32 %v948_v57  ;;  %vm299_vm0 = vweird.f32 %v953_v19  ;;  %vm288_vm1 = vweird.f32 %v946_v53 }
  0x9c   :  { %v336_v42 = vsub.f32 1.5, %v335_v56  ;;  %v140_v10 = vpop.xlane.xlu0 %139  ;;  %v295_v11 = vmul.f32 0.5, %v294_v58  ;;  %vm320_vm14 = vmor %vm318_vm9, %vm319_vm12  ;;  %vm278_vm2 = vweird.f32 %v951_v15  ;;  %vm268_vm6 = vweird.f32 %v958_v36 }
  0x9d   :  { %v970_v52 = vpop.eup %623  ;;  %v972_v21 = vmax.f32 %v140_v10, 1e-16  ;;  %v137_v37 = vpop.xlane.xlu1 %136  ;;  %v316_v41 = vsub.f32 1.5, %v315_v27  ;;  %v306_v10 = vsub.f32 1.5, %v305_v9  ;;  %v331_v9 = vsel %vm330_vm10, %v930_v20, %v327_v54  ;;  %vm300_vm3 = vmor %vm298_vm15, %vm299_vm0 }
  0x9e   :  { %v134_v0 = vpop.xlane.xlu2 %133  ;;  %v975_v1 = vpop.eup %625  ;;  %v283_v39 = vmul.f32 %v970_v52, %v946_v53  ;;  %v982_v28 = vmax.f32 %v137_v37, 1e-16  ;;  %v337_v40 = vmul.f32 %v618_v43, %v336_v42  ;;  %vm289_vm4 = vweird.f32 %v970_v52 }
  0x9f   :  { %v980_v44 = vmax.f32 %v134_v0, 1e-16  ;;  %629 = vrsqrt.f32 %v972_v21  ;;  %v273_v56 = vmul.f32 %v975_v1, %v951_v15  ;;  %v992_v51 = vpop.eup %627  ;;  %v317_v37 = vmul.f32 %v948_v57, %v316_v41  ;;  %vm290_vm7 = vmor %vm288_vm1, %vm289_vm4 }
  0xa0   :  { %v284_v27 = vmul.f32 %v970_v52, %v283_v39  ;;  %v341_v42 = vsel %vm340_vm8, %v618_v43, %v337_v40  ;;  %v307_v58 = vmul.f32 %v941_v38, %v306_v10  ;;  %v296_v10 = vsub.f32 1.5, %v295_v11 }
  0xa1   :  { %631 = vrsqrt.f32 %v980_v44  ;;  %v400_v55 = vmul.f32 %v341_v42, %v794_v12  ;;  %v401_v0 = vmul.f32 %v341_v42, %v796_v13  ;;  %v274_v43 = vmul.f32 %v975_v1, %v273_v56 }
  0xa2   :  { %633 = vrsqrt.f32 %v982_v28  ;;  %v263_v12 = vmul.f32 %v992_v51, %v958_v36  ;;  %v285_v59 = vmul.f32 0.5, %v284_v27  ;;  %v398_v56 = vmul.f32 %v331_v9, %v774_v2 }
  0xa3   :  { %429 = vmatpush.xpose.msra.mxu0 %v400_v55  ;;  %449 = vmatpush.xpose.msra.mxu1 %v401_v0  ;;  %v399_v27 = vmul.f32 %v331_v9, %v780_v5  ;;  %v275_v2 = vmul.f32 0.5, %v274_v43  ;;  %vm279_vm5 = vweird.f32 %v975_v1  ;;  %vm258_vm8 = vweird.f32 %v972_v21 }
  0xa4   :  { %v131_v13 = vpop.xlane.xlu0 %130  ;;  %v264_v5 = vmul.f32 %v992_v51, %v263_v12  ;;  %vm280_vm9 = vmor %vm278_vm2, %vm279_vm5  ;;  %vm269_vm10 = vweird.f32 %v992_v51  ;;  %vm248_vm5 = vweird.f32 %v982_v28 }
  0xa5   :  { %v1010_v39 = vpop.eup %629  ;;  %v173_v42 = vpop.xlane.xlu1 %172  ;;  %v1023_v54 = vmax.f32 %v131_v13, 1e-16  ;;  %v321_v13 = vsel %vm320_vm14, %v948_v57, %v317_v37  ;;  %v311_v57 = vsel %vm1017_vm13, %v941_v38, %v307_v58  ;;  %v286_v37 = vsub.f32 1.5, %v285_v59  ;;  %vm270_vm13 = vmor %vm268_vm6, %vm269_vm10 }
  0xa6   :  { %v128_v40 = vpop.xlane.xlu2 %127  ;;  %v1027_v55 = vmax.f32 %v173_v42, 1e-16  ;;  %v253_v0 = vmul.f32 %v1010_v39, %v972_v21  ;;  %v396_v43 = vmul.f32 %v321_v13, %v798_v14  ;;  %v397_v12 = vmul.f32 %v321_v13, %v800_v16 }
  0xa7   :  { %v1021_v41 = vpop.eup %631  ;;  %430 = vmatpush.xpose.msra.mxu0 %v398_v56  ;;  %450 = vmatpush.xpose.msra.mxu1 %v399_v27  ;;  %v1040_v9 = vmax.f32 %v128_v40, 1e-16  ;;  %v297_v42 = vmul.f32 %v953_v19, %v296_v10  ;;  %v276_v56 = vsub.f32 1.5, %v275_v2  ;;  %v265_v27 = vmul.f32 0.5, %v264_v5 }
  0xa8   :  { %v1033_v6 = vpop.eup %633  ;;  %v233_v22 = vmul.f32 %v1021_v41, %v980_v44  ;;  %635 = vrsqrt.f32 %v1027_v55  ;;  %v254_v40 = vmul.f32 %v1010_v39, %v253_v0  ;;  %v394_v59 = vmul.f32 %v311_v57, %v784_v7 }
  0xa9   :  { %v243_v11 = vmul.f32 %v1033_v6, %v982_v28  ;;  %637 = vrsqrt.f32 %v1023_v54  ;;  %v395_v0 = vmul.f32 %v311_v57, %v786_v8  ;;  %v287_v7 = vmul.f32 %v970_v52, %v286_v37 }
  0xaa   :  { %639 = vrsqrt.f32 %v1040_v9  ;;  %v234_v14 = vmul.f32 %v1021_v41, %v233_v22  ;;  %v255_v2 = vmul.f32 0.5, %v254_v40  ;;  %v301_v22 = vsel %vm300_vm3, %v953_v19, %v297_v42 }
  0xab   :  { %431 = vmatpush.xpose.msra.mxu0 %v396_v43  ;;  %451 = vmatpush.xpose.msra.mxu1 %v397_v12  ;;  %v244_v16 = vmul.f32 %v1033_v6, %v243_v11  ;;  %v277_v57 = vmul.f32 %v975_v1, %v276_v56  ;;  %v266_v37 = vsub.f32 1.5, %v265_v27  ;;  %v392_v53 = vmul.f32 %v301_v22, %v802_v17 }
  0xac   :  { %v170_v38 = vpop.xlane.xlu0 %169  ;;  %v1092_v19 = vmul.f32 0.5, %v234_v14  ;;  %v393_v42 = vmul.f32 %v301_v22, %v804_v18  ;;  %v291_v56 = vsel %vm290_vm7, %v970_v52, %v287_v7  ;;  %v256_v27 = vsub.f32 1.5, %v255_v2 }
  0xad   :  { %v1066_v58 = vmax.f32 %v170_v38, 1e-16  ;;  %v125_v10 = vpop.xlane.xlu1 %124  ;;  %v1094_v43 = vmul.f32 0.5, %v244_v16  ;;  %v281_v14 = vsel %vm280_vm9, %v975_v1, %v277_v57  ;;  %vm368_vm11 = vweird.f32 %v1027_v55 }
  0xae   :  { %v414_v20 = vpop.xlane.xlu2 %413  ;;  %v1074_v29 = vpop.eup %635  ;;  %v1077_v5 = vmax.f32 %v125_v10, 1e-16  ;;  %v390_v16 = vmul.f32 %v291_v56, %v818_v30  ;;  %v391_v7 = vmul.f32 %v291_v56, %v820_v31  ;;  %v389_v36 = vmul.f32 %v281_v14, %v824_v33 }
  0xaf   :  { %v1070_v13 = vmax.f32 %v414_v20, 1e-16  ;;  %641 = vrsqrt.f32 %v1066_v58  ;;  %v1080_v11 = vpop.eup %637  ;;  %v363_v8 = vmul.f32 %v1074_v29, %v1027_v55  ;;  %432 = vmatpush.xpose.msra.mxu0 %v394_v59  ;;  %452 = vmatpush.xpose.msra.mxu1 %v395_v0  ;;  %vm369_vm12 = vweird.f32 %v1074_v29 }
  0xb0   :  { %v1100_v12 = vpop.eup %639  ;;  %v223_v38 = vmul.f32 %v1080_v11, %v1023_v54  ;;  %v246_v18 = vsub.f32 1.5, %v1094_v43  ;;  %v267_v20 = vmul.f32 %v992_v51, %v266_v37  ;;  %vm358_vm14 = vweird.f32 %v1066_v58  ;;  %vm370_vm15 = vmor %vm368_vm11, %vm369_vm12 }
  0xb1   :  { %643 = vrsqrt.f32 %v1070_v13  ;;  %v364_v40 = vmul.f32 %v1074_v29, %v363_v8  ;;  %v213_v52 = vmul.f32 %v1100_v12, %v1040_v9  ;;  %v388_v8 = vmul.f32 %v281_v14, %v822_v32 }
  0xb2   :  { %645 = vrsqrt.f32 %v1077_v5  ;;  %v224_v22 = vmul.f32 %v1080_v11, %v223_v38  ;;  %vm422_vm0 = vweird.f32 %v1070_v13  ;;  %v271_v32 = vsel %vm270_vm13, %v992_v51, %v267_v20 }
  0xb3   :  { %v365_v15 = vmul.f32 0.5, %v364_v40  ;;  %433 = vmatpush.xpose.msra.mxu0 %v392_v53  ;;  %453 = vmatpush.xpose.msra.mxu1 %v393_v42  ;;  %v257_v40 = vmul.f32 %v1010_v39, %v256_v27  ;;  %vm259_vm1 = vweird.f32 %v1010_v39  ;;  %v214_v51 = vmul.f32 %v1100_v12, %v213_v52 }
  0xb4   :  { %v122_v59 = vpop.xlane.xlu0 %121  ;;  %v1156_v38 = vmul.f32 0.5, %v224_v22  ;;  %vm260_vm4 = vmor %vm258_vm8, %vm259_vm1  ;;  %vm249_vm7 = vweird.f32 %v1033_v6  ;;  %vm238_vm9 = vweird.f32 %v980_v44  ;;  %v386_v21 = vmul.f32 %v271_v32, %v826_v34 }
  0xb5   :  { %v1113_v17 = vpop.eup %641  ;;  %v1124_v0 = vmax.f32 %v122_v59, 1e-16  ;;  %v366_v2 = vsub.f32 1.5, %v365_v15  ;;  %v261_v14 = vsel %vm260_vm4, %v1010_v39, %v257_v40  ;;  %vm250_vm10 = vmor %vm248_vm5, %vm249_vm7  ;;  %vm239_vm11 = vweird.f32 %v1021_v41 }
  0xb6   :  { %v353_v1 = vmul.f32 %v1113_v17, %v1066_v58  ;;  %vm359_vm2 = vweird.f32 %v1113_v17  ;;  %v236_v58 = vsub.f32 1.5, %v1092_v19  ;;  %v226_v34 = vsub.f32 1.5, %v1156_v38  ;;  %vm240_vm12 = vmor %vm238_vm9, %vm239_vm11 }
  0xb7   :  { %v1120_v10 = vpop.eup %643  ;;  %434 = vmatpush.xpose.msra.mxu0 %v390_v16  ;;  %454 = vmatpush.xpose.msra.mxu1 %v391_v7  ;;  %v367_v57 = vmul.f32 %v1074_v29, %v366_v2  ;;  %647 = vrsqrt.f32 %v1124_v0  ;;  %vm1170_vm6 = vmor %vm358_vm14, %vm359_vm2  ;;  %v247_v16 = vmul.f32 %v1033_v6, %v246_v18  ;;  %v384_v7 = vmul.f32 %v261_v14, %v842_v45 }
  0xb8   :  { %v417_v30 = vmul.f32 %v1120_v10, %v1070_v13  ;;  %v354_v31 = vmul.f32 %v1113_v17, %v353_v1  ;;  %v1144_v37 = vpop.eup %645  ;;  %vm423_vm3 = vweird.f32 %v1120_v10  ;;  %v385_v2 = vmul.f32 %v261_v14, %v844_v46 }
  0xb9   :  { %v371_v53 = vsel %vm370_vm15, %v1074_v29, %v367_v57  ;;  %v203_v15 = vmul.f32 %v1144_v37, %v1077_v5  ;;  %v387_v29 = vmul.f32 %v271_v32, %v828_v35  ;;  %vm424_vm8 = vmor %vm422_vm0, %vm423_vm3  ;;  %v215_v35 = vmul.f32 0.5, %v214_v51 }
  0xba   :  { %v418_v43 = vmul.f32 %v1120_v10, %v417_v30  ;;  %v355_v55 = vmul.f32 0.5, %v354_v31  ;;  %v406_v42 = vmul.f32 %v371_v53, %v874_v3  ;;  %v407_v56 = vmul.f32 %v371_v53, %v876_v4 }
  0xbb   :  { %435 = vmatpush.xpose.msra.mxu0 %v388_v8  ;;  %455 = vmatpush.xpose.msra.mxu1 %v389_v36  ;;  %v204_v1 = vmul.f32 %v1144_v37, %v203_v15  ;;  %v251_v28 = vsel %vm250_vm10, %v1033_v6, %v247_v16  ;;  %v237_v45 = vmul.f32 %v1021_v41, %v236_v58  ;;  %vm228_vm13 = vweird.f32 %v1023_v54 }
  0xbc   :  { %v419_v33 = vmul.f32 0.5, %v418_v43  ;;  %v356_v27 = vsub.f32 1.5, %v355_v55  ;;  %482 = vmatpush.xpose.msra.mxu2 %v406_v42  ;;  %502 = vmatpush.xpose.msra.mxu3 %v407_v56  ;;  %vm229_vm14 = vweird.f32 %v1080_v11  ;;  %v737_v46 = vmov 0   ;;  %v1286_v55 = vld [vmem:[#allocation12_spill] sm:$0xff] }
  0xbd   :  { %v1187_v20 = vpop.eup %647  ;;  %609 = vset.pattern.permute.xlu1 %v737_v46  ;;  %610 = vset.pattern.permute.xlu0 %v737_v46  ;;  %v383_v6 = vmul.f32 %v251_v28, %v852_v50  ;;  %v205_v44 = vmul.f32 0.5, %v204_v1  ;;  %v241_v8 = vsel %vm240_vm12, %v1021_v41, %v237_v45  ;;  %v227_v31 = vmul.f32 %v1080_v11, %v226_v34  ;;  %vm230_vm0 = vmor %vm228_vm13, %vm229_vm14  ;;  %v531_v34 = vld [vmem:[%s1271_s3] sm:$0x3]  ;;  %s738_s3 = smov [#allocation7]  }
  0xbe   :  { %v420_v3 = vsub.f32 1.5, %v419_v33  ;;  %v357_v59 = vmul.f32 %v1113_v17, %v356_v27  ;;  %vm218_vm1 = vweird.f32 %v1040_v9  ;;  %vm219_vm2 = vweird.f32 %v1100_v12  ;;  %s590_s28 = sshll.u32 %s738_s3, 4  ;;  %s591_s28 = int_to_ptr.vmem [resolvable:$true] %s590_s28 }
  0xbf   :  { %436 = vmatpush.xpose.msra.mxu0 %v386_v21  ;;  %456 = vmatpush.xpose.msra.mxu1 %v387_v29  ;;  %v381_v50 = vmul.f32 %v241_v8, %v848_v48  ;;  %v206_v36 = vsub.f32 1.5, %v205_v44  ;;  %v231_v57 = vsel %vm230_vm0, %v1080_v11, %v227_v31  ;;  %vm220_vm3 = vmor %vm218_vm1, %vm219_vm2  ;;  %vm208_vm4 = vweird.f32 %v1077_v5 }
  0xc0   :  { %v421_v52 = vmul.f32 %v1120_v10, %v420_v3  ;;  %v361_v13 = vsel %vm1170_vm6, %v1113_v17, %v357_v59  ;;  %vm209_vm5 = vweird.f32 %v1144_v37  ;;  %v378_v54 = vmul.f32 %v231_v57, %v866_v60 }
  0xc1   :  { %v404_v39 = vmul.f32 %v361_v13, %v890_v23  ;;  %v405_v19 = vmul.f32 %v361_v13, %v892_v24  ;;  %v508_v23 = vld [vmem:[%s1270_s2] sm:$0xff]  ;;  %v193_v24 = vmul.f32 %v1187_v20, %v1124_v0  ;;  %v379_v9 = vmul.f32 %v231_v57, %v868_v61  ;;  %vm210_vm6 = vmor %vm208_vm4, %vm209_vm5 }
  0xc2   :  { %v425_v18 = vsel %vm424_vm8, %v1120_v10, %v421_v52  ;;  %vm509_vm15 = vcmp.ne.s32.totalorder %v508_v23, 0  ;;  %v207_v32 = vmul.f32 %v1144_v37, %v206_v36  ;;  %vm198_vm7 = vweird.f32 %v1124_v0  ;;  %v1287_v0 = vld [vmem:[#allocation13_spill] sm:$0xff] }
  0xc3   :  { %v1205_v22 = vmul.f32 %v425_v18, %v894_v25  ;;  %v1208_v17 = vmul.f32 %v425_v18, %v896_v26  ;;  %483 = vmatpush.xpose.msra.mxu2 %v404_v39  ;;  %503 = vmatpush.xpose.msra.mxu3 %v405_v19  ;;  %v216_v25 = vsub.f32 1.5, %v215_v35  ;;  %v382_v26 = vmul.f32 %v251_v28, %v850_v49 }
  0xc4   :  { %437 = vmatpush.xpose.msra.mxu0 %v384_v7  ;;  %457 = vmatpush.xpose.msra.mxu1 %v385_v2  ;;  %v510_v10 = vsel %vm509_vm15, 1, %v737_v46  ;;  %v194_v30 = vmul.f32 %v1187_v20, %v193_v24  ;;  %v380_v49 = vmul.f32 %v241_v8, %v846_v47  ;;  %vm199_vm9 = vweird.f32 %v1187_v20 }
  0xc5   :  { %512 = vperm.xlu1 %609, %v510_v10   ;;  %v217_v43 = vmul.f32 %v1100_v12, %v216_v25  ;;  %v211_v60 = vsel %vm210_vm6, %v1144_v37, %v207_v32  ;;  %vm200_vm8 = vmor %vm198_vm7, %vm199_vm9  ;;  %vm523_vm11 = vcmask 130048   ;;  %v534_v39 = vperm.slane %v531_v34, 1 }
  0xc6   :  { %484 = vmatmul.f32.vlgmr.msra.gmra.mxu2 %v1205_v22  ;;  %504 = vmatmul.f32.vlgmr.msra.gmra.mxu3 %v1208_v17  ;;  %v195_v41 = vmul.f32 0.5, %v194_v30  ;;  %v375_v53 = vmul.f32 %v211_v60, %v1286_v55  ;;  %v533_v7 = vperm.slane %v531_v34, 0  ;;  %vm541_vm12 = vcmask 1040384  }
  0xc7   :  { %v221_v48 = vsel %vm220_vm3, %v1100_v12, %v217_v43  ;;  %v1285_v12 = vld [vmem:[#allocation11_spill] sm:$0xff]  ;;  %vm543_vm13 = vcmask 122880  }
  0xc8   :  { %438 = vmatpush.xpose.msra.mxu0 %v382_v26  ;;  %458 = vmatpush.xpose.msra.mxu1 %v383_v6  ;;  %v196_v47 = vsub.f32 1.5, %v195_v41  ;;  %v376_v5 = vmul.f32 %v221_v48, %v870_v62  ;;  %v377_v11 = vmul.f32 %v221_v48, %v872_v63  ;;  %v374_v40 = vmul.f32 %v211_v60, %v1285_v12  ;;  %v1288_v62 = vld [vmem:[#allocation14_spill] sm:$0xff] }
  0xca   :  { %v197_v61 = vmul.f32 %v1187_v20, %v196_v47 }
  0xcc   :  { %439 = vmatpush.xpose.msra.mxu0 %v380_v49  ;;  %459 = vmatpush.xpose.msra.mxu1 %v381_v50  ;;  %v201_v33 = vsel %vm200_vm8, %v1187_v20, %v197_v61 }
  0xcd   :  { %v372_v42 = vmul.f32 %v201_v33, %v1287_v0  ;;  %v373_v56 = vmul.f32 %v201_v33, %v1288_v62 }
  0xd0   :  { %440 = vmatpush.xpose.msra.mxu0 %v378_v54  ;;  %460 = vmatpush.xpose.msra.mxu1 %v379_v9 }
  0xd4   :  { %441 = vmatpush.xpose.msra.mxu0 %v376_v5  ;;  %461 = vmatpush.xpose.msra.mxu1 %v377_v11  ;;  %v580_v11 = vlaneseq }
  0xd6   :  { %vm582_vm2 = vcmp.lt.s32.totalorder %v580_v11, 144 }
  0xd8   :  { %442 = vmatpush.xpose.msra.mxu0 %v374_v40  ;;  %462 = vmatpush.xpose.msra.mxu1 %v375_v53 }
  0xdc   :  { %443 = vmatpush.xpose.msra.mxu0 %v372_v42  ;;  %463 = vmatpush.xpose.msra.mxu1 %v373_v56 }
  0xdf   :  { %444 = vmatmul.f32.vlgmr.msra.gmra.mxu0 %v1205_v22  ;;  %464 = vmatmul.f32.vlgmr.msra.gmra.mxu1 %v1208_v17 }
 0x137   :  { %v513_v63 = vpop.permute.xlu1 %512 }
 0x138   :  { %vm514_vm10 = vcmp.eq.s32.totalorder %v513_v63, 1 }
 0x149   :  { %v485_v37 = vpop.f32.mrf.mxu2  ;;  %v505_v38 = vpop.f32.mrf.mxu3 }
 0x14a   :  { %v506_v51 = vadd.f32 %v505_v38, %v485_v37 }
 0x14c   :  { %v516_v27 = vsel %vm514_vm10, %v506_v51, 0.0 }
 0x14d   :  { %v524_v15 = vsel %vm523_vm11, %v516_v27, -inf }
 0x14e   :  { %v525_v3 = vrot.slane %v524_v15, 4 }
 0x150   :  { %v526_v4 = vmax.f32 %v524_v15, %v525_v3 }
 0x152   :  { %v527_v21 = vrot.slane %v526_v4, 2 }
 0x154   :  { %v528_v29 = vmax.f32 %v526_v4, %v527_v21 }
 0x156   :  { %v529_v16 = vrot.slane %v528_v29, 1 }
 0x158   :  { %v530_v1 = vmax.f32 %v528_v29, %v529_v16 }
 0x15a   :  { %v538_v2 = vadd.f32 %v534_v39, %v530_v1 }
 0x15c   :  { %v445_v59 = vpop.f32.mrf.mxu0  ;;  %v465_v58 = vpop.f32.mrf.mxu1  ;;  %v540_v23 = vmul.f32 20.0, %v538_v2 }
 0x15d   :  { %v466_v14 = vadd.f32 %v465_v58, %v445_v59 }
 0x15e   :  { %v544_v45 = vsel %vm543_vm13, %v540_v23, -inf }
 0x15f   :  { %v515_v52 = vsel %vm514_vm10, %v466_v14, 0.0 }
 0x160   :  { %v517_v20 = vrot.slane %v515_v52, 4 }
 0x162   :  { %v518_v35 = vmax.f32 %v515_v52, %v517_v20 }
 0x164   :  { %v519_v13 = vrot.slane %v518_v35, 2 }
 0x166   :  { %v520_v19 = vmax.f32 %v518_v35, %v519_v13 }
 0x168   :  { %v521_v18 = vrot.slane %v520_v19, 1 }
 0x16a   :  { %v522_v22 = vmax.f32 %v520_v19, %v521_v18 }
 0x16c   :  { %v537_v17 = vadd.f32 %v533_v7, %v522_v22 }
 0x16e   :  { %v539_v24 = vmul.f32 20.0, %v537_v17 }
 0x170   :  { %v542_v28 = vsel %vm541_vm12, %v539_v24, -inf }
 0x171   :  { %v545_v46 = vmax.f32 %v542_v28, %v544_v45 }
 0x173   :  { %546 = vmax.xlane.f32.xlu2 %v545_v46 }
 0x1e6   :  { %v547_v25 = vpop.xlane.xlu2 %546 }
 0x1e7   :  { %v548_v26 = vsub.f32 %v539_v24, %v547_v25  ;;  %v549_v6 = vsub.f32 %v540_v23, %v547_v25 }
 0x1e9   :  { %v550_v10 = vmul.f32 1.442695, %v548_v26  ;;  %v552_v44 = vmul.f32 1.442695, %v549_v6 }
 0x1eb   :  { %649 = vpow2.f32 %v550_v10 }
 0x1ec   :  { %651 = vpow2.f32 %v552_v44 }
 0x1f1   :  { %v650_v30 = vpop.eup %649 }
 0x1f2   :  { %v652_v8 = vpop.eup %651  ;;  %v554_v31 = vsel %vm541_vm12, %v650_v30, 0.0 }
 0x1f3   :  { %v555_v49 = vsel %vm543_vm13, %v652_v8, 0.0 }
 0x1f4   :  { %v556_v50 = vadd.f32 %v555_v49, %v554_v31 }
 0x1f6   :  { %557 = vadd.xlane.f32.xlu0 %v556_v50 }
 0x269   :  { %v558_v36 = vpop.xlane.xlu0 %557 }
 0x26a   :  { %653 = vrcp.f32 %v558_v36  ;;  %v570_v54 = vand.u32 2147483648, %v558_v36  ;;  %v568_v47 = vand.u32 2147483647, %v558_v36  ;;  %vm564_vm15 = vweird.f32 %v558_v36 }
 0x26c   :  { %v571_v32 = vor.u32 1.1754944e-38, %v570_v54  ;;  %vm569_vm1 = vcmp.eq.f32.partialorder %v568_v47, 8.507059e+37 }
 0x270   :  { %v654_v41 = vpop.eup %653 }
 0x271   :  { %v560_v57 = vmul.f32 %v654_v41, %v558_v36  ;;  %vm565_vm14 = vweird.f32 %v654_v41 }
 0x272   :  { %vm566_vm0 = vmor %vm564_vm15, %vm565_vm14 }
 0x273   :  { %v561_v43 = vsub.f32 1.0, %v560_v57 }
 0x275   :  { %v562_v9 = vmul.f32 %v654_v41, %v561_v43 }
 0x277   :  { %v563_v48 = vadd.f32 %v654_v41, %v562_v9 }
 0x279   :  { %v567_v5 = vsel %vm566_vm0, %v654_v41, %v563_v48 }
 0x27a   :  { %v572_v60 = vsel %vm569_vm1, %v571_v32, %v567_v5 }
 0x27b   :  { %v574_v61 = vmul.f32 %v652_v8, %v572_v60  ;;  %v573_v12 = vmul.f32 %v650_v30, %v572_v60 }
 0x27d   :  { %v577_v40 = vrot.slane %v574_v61, 7 }
 0x27f   :  { %v578_v55 = vsel %vm541_vm12, %v573_v12, %v577_v40 }
 0x280   :  { %584 = vst.msk [vmem:[#allocation7] sm:$0x3] %vm582_vm2, %v578_v55 }
 0x281   :  { %595 = dma.vmem_to_hbm [thread:$0]  %s591_s28, 32, %s593_s5, [#allocation4]  }
 0x282   :  { %731 = dma.done.wait [#allocation4], 32  }
 0x283   :  { %732 = vsyncadd [#allocation4], 4294967264 }
 0x284   :  { %600 = vsyncpa [#allocation3], 1 }
 0x285   :  { %601 = vsyncpa [#allocation6], 1 }
 0x286   :  { %602 = vsyncpa [#allocation4], 1 }

</bundles_post_ra>
